<compile_context>
chip_gen: v5e
topology: v5e:2x2
jax: 0.10.0
libtpu: 0.0.40
codegen_flags: <defaults>
</compile_context>

<pallas_src>
import jax
import jax.numpy as jnp
from jax import lax
from jax.experimental import pallas as pl
from jax.experimental.pallas import tpu as pltpu

NUM_NODES = 64
_LANE = 128


# ----------------------------------------------------------------------------
# Kernels
# ----------------------------------------------------------------------------
def _fwd_feature_major(x_ref, w1_ref, b1_ref, w2_ref, b2_ref, w3_ref, b3_ref,
                       tanh_dtype):
    """Fused 3-layer MLP; returns f32 Q-values [num_action, batch_tile]."""
    cdt = w1_ref.dtype  # MXU operand dtype (f32 or bf16)

    # Layer 1: contract over num_state = last dim of BOTH operands (NT form):
    #   [64, S] x [bt, S] -> [64, bt]   (feature-major, batch on lanes).
    a1 = lax.dot_general(
        w1_ref[...], x_ref[...], (((1,), (1,)), ((), ())),
        preferred_element_type=jnp.float32) + b1_ref[...]
    h1 = jnp.tanh(a1.astype(tanh_dtype)).astype(cdt)

    a2 = jnp.dot(w2_ref[...], h1,
                 preferred_element_type=jnp.float32) + b2_ref[...]
    h2 = jnp.tanh(a2.astype(tanh_dtype)).astype(cdt)

    return jnp.dot(w3_ref[...], h2,
                   preferred_element_type=jnp.float32) + b3_ref[...]


def _make_q_kernel(tanh_dtype):
    def kernel(x_ref, w1_ref, b1_ref, w2_ref, b2_ref, w3_ref, b3_ref, o_ref):
        q = _fwd_feature_major(x_ref, w1_ref, b1_ref, w2_ref, b2_ref,
                               w3_ref, b3_ref, tanh_dtype)
        o_ref[...] = q.astype(o_ref.dtype)          # lane-dense [A, bt] store
    return kernel


def _make_act_kernel(tanh_dtype):
    def kernel(x_ref, w1_ref, b1_ref, w2_ref, b2_ref, w3_ref, b3_ref, o_ref):
        q = _fwd_feature_major(x_ref, w1_ref, b1_ref, w2_ref, b2_ref,
                               w3_ref, b3_ref, tanh_dtype)
        # Greedy action: argmax over the small action/sublane axis with
        # first-max tie-breaking (matches jnp.argmax). Lane-dense [1, bt]
        # int32 output row.
        num_action = q.shape[0]
        best = jnp.max(q, axis=0, keepdims=True)
        idx = lax.broadcasted_iota(jnp.int32, q.shape, 0)
        cand = jnp.where(q == best, idx, num_action)
        o_ref[...] = jnp.min(cand, axis=0, keepdims=True).astype(jnp.int32)
    return kernel


# ----------------------------------------------------------------------------
# Wrapper machinery
# ----------------------------------------------------------------------------
def _plan_batch(B, batch_tile):
    bt = max(_LANE, (int(batch_tile) // _LANE) * _LANE)
    # Never tile wider than the (128-padded) batch itself.
    bt = min(bt, max(_LANE, -(-B // _LANE) * _LANE))
    # v7x: guarantee >= 2 "parallel" grid steps when the batch allows it.
    if B >= 2 * _LANE:
        bt = min(bt, max(_LANE, ((B // 2) // _LANE) * _LANE))
    b_pad = -(-B // bt) * bt
    return bt, b_pad


def _prep_inputs(x, params, compute_dtype, b_pad):
    B = x.shape[0]
    if b_pad != B:
        x = jnp.pad(x, ((0, b_pad - B), (0, 0)))
    w1, b1 = params["w1"], params["b1"]
    w2, b2 = params["w2"], params["b2"]
    w3, b3 = params["w3"], params["b3"]
    if compute_dtype is not None:
        x = x.astype(compute_dtype)
        w1 = w1.astype(compute_dtype)
        w2 = w2.astype(compute_dtype)
        w3 = w3.astype(compute_dtype)
    # Biases stay f32: they're added onto the f32 accumulator.
    b1 = b1.astype(jnp.float32)
    b2 = b2.astype(jnp.float32)
    b3 = b3.astype(jnp.float32)
    return x, (w1, b1, w2, b2, w3, b3)


def _whole(a):
    nd = a.ndim
    return pl.BlockSpec(a.shape, lambda i, nd=nd: (0,) * nd)


def _compiler_params(bt, num_state, num_action, x_itemsize):
    # Rough double-buffered VMEM footprint; only raise the scoped limit when a
    # very large tile would cross the smallest (v5e, 16 MiB) default.
    est = (2 * bt * num_state * x_itemsize        # x tiles
           + 2 * bt * num_action * 4              # output tiles
           + 4 * NUM_NODES * bt * 4)              # activation slabs + temps
    vmem_limit = None
    if est > 12 * 1024 * 1024:
        vmem_limit = min(2 * est, 64 * 1024 * 1024)
    return pltpu.CompilerParams(
        dimension_semantics=("parallel",),
        vmem_limit_bytes=vmem_limit,
    )


def _run(kernel, x, weights, bt, out_shape, out_block):
    b_pad, num_state = x.shape
    grid = (b_pad // bt,)
    w1, b1, w2, b2, w3, b3 = weights
    return pl.pallas_call(
        kernel,
        out_shape=out_shape,
        grid_spec=pl.GridSpec(
            grid=grid,
            in_specs=[
                # x tile: [batch_tile, num_state] — one contiguous DMA,
                # contraction over its last dim happens in-kernel.
                pl.BlockSpec((bt, num_state), lambda i: (i, 0)),
                # Weights / biases: full blocks, resident across all steps.
                _whole(w1), _whole(b1),
                _whole(w2), _whole(b2),
                _whole(w3), _whole(b3),
            ],
            out_specs=pl.BlockSpec(out_block, lambda i: (0, i)),
        ),
        compiler_params=_compiler_params(bt, num_state, out_block[0],
                                         x.dtype.itemsize),
    )(x, w1, b1, w2, b2, w3, b3)


def _tanh_dtype(compute_dtype, tanh_in_compute_dtype):
    if compute_dtype is not None and tanh_in_compute_dtype:
        return compute_dtype
    return jnp.float32


# ----------------------------------------------------------------------------
# Public API
# ----------------------------------------------------------------------------
def deep_q_net_forward(x, params, *, batch_tile=4096, compute_dtype=None,
                       tanh_in_compute_dtype=False, transpose_output=True):
    """DeepQNet forward.

    x: [B, num_state] float32.
    params: PyTorch-native layout:
        w1 [64, num_state], b1 [64, 1]
        w2 [64, 64],        b2 [64, 1]
        w3 [num_action,64], b3 [num_action, 1]
    Returns [B, num_action] (or [num_action, B] if transpose_output=False).
    """
    B, _ = x.shape
    out_dtype = x.dtype
    num_action = params["w3"].shape[0]
    bt, b_pad = _plan_batch(B, batch_tile)
    xp, weights = _prep_inputs(x, params, compute_dtype, b_pad)
    kernel = _make_q_kernel(_tanh_dtype(compute_dtype, tanh_in_compute_dtype))
    out_fm = _run(kernel, xp, weights, bt,
                  jax.ShapeDtypeStruct((num_action, b_pad), out_dtype),
                  (num_action, bt))
    out_fm = out_fm[:, :B]
    return jnp.transpose(out_fm) if transpose_output else out_fm


def deep_q_net_act(x, params, *, batch_tile=4096, compute_dtype=None,
                   tanh_in_compute_dtype=False):
    """Fused forward + greedy argmax over actions. Returns int32 [B]."""
    B, _ = x.shape
    bt, b_pad = _plan_batch(B, batch_tile)
    xp, weights = _prep_inputs(x, params, compute_dtype, b_pad)
    kernel = _make_act_kernel(_tanh_dtype(compute_dtype, tanh_in_compute_dtype))
    act = _run(kernel, xp, weights, bt,
               jax.ShapeDtypeStruct((1, b_pad), jnp.int32),
               (1, bt))
    return act[0, :B]


# ----------------------------------------------------------------------------
# Reference & init
# ----------------------------------------------------------------------------
def init_params(key, num_state, num_action, dtype=jnp.float32):
    """Deterministic synthetic init (PyTorch-Linear-like fan_in bound)."""
    ks = jax.random.split(key, 6)

    def lin(kw, kb, fan_in, fan_out):
        bound = 1.0 / jnp.sqrt(fan_in)
        w = jax.random.uniform(kw, (fan_out, fan_in), dtype, -bound, bound)
        b = jax.random.uniform(kb, (fan_out, 1), dtype, -bound, bound)
        return w, b

    w1, b1 = lin(ks[0], ks[1], num_state, NUM_NODES)
    w2, b2 = lin(ks[2], ks[3], NUM_NODES, NUM_NODES)
    w3, b3 = lin(ks[4], ks[5], NUM_NODES, num_action)
    return {"w1": w1, "b1": b1, "w2": w2, "b2": b2, "w3": w3, "b3": b3}


def reference_forward(x, p):
    h1 = jnp.tanh(x @ p["w1"].T + p["b1"].T)
    h2 = jnp.tanh(h1 @ p["w2"].T + p["b2"].T)
    return h2 @ p["w3"].T + p["b3"].T


# ----------------------------------------------------------------------------
# Smoke test
# ----------------------------------------------------------------------------
if __name__ == "__main__":
    num_state = 8
    num_action = 4
    batch = 256

    key = jax.random.PRNGKey(0)
    k_x, k_p = jax.random.split(key)
    x = jax.random.normal(k_x, (batch, num_state), dtype=jnp.float32)
    params = init_params(k_p, num_state, num_action)

    ref = reference_forward(x, params)

    # f32 path; B=256 -> two parallel 128-row tiles (both v7x TCs busy).
    out = jax.block_until_ready(deep_q_net_forward(x, params))
    assert out.shape == (batch, num_action)
    assert jnp.allclose(out, ref, atol=1e-5, rtol=1e-5)

    # Feature-major output path (no wrapper transpose at all).
    out_fm = jax.block_until_ready(
        deep_q_net_forward(x, params, transpose_output=False))
    assert out_fm.shape == (num_action, batch)
    assert jnp.allclose(out_fm.T, ref, atol=1e-5, rtol=1e-5)

    # Ragged batch (pad-to-tile path): B=300 -> padded to 384, 3 grid steps.
    x_rag = jax.random.normal(jax.random.PRNGKey(1), (300, num_state),
                              dtype=jnp.float32)
    ref_rag = reference_forward(x_rag, params)
    out_rag = jax.block_until_ready(deep_q_net_forward(x_rag, params))
    assert out_rag.shape == (300, num_action)
    assert jnp.allclose(out_rag, ref_rag, atol=1e-5, rtol=1e-5)

    # bf16 MXU operands + bf16 tanh (v6e/v7x flavour) — loose tolerance since
    # x as well as the weights are quantized.
    out_bf = jax.block_until_ready(deep_q_net_forward(
        x, params, compute_dtype=jnp.bfloat16, tanh_in_compute_dtype=True))
    assert out_bf.shape == (batch, num_action)
    assert bool(jnp.all(jnp.isfinite(out_bf)))
    assert float(jnp.max(jnp.abs(out_bf - ref))) < 0.25

    # Fused greedy-action kernel (the DQN act() use case).
    act = jax.block_until_ready(deep_q_net_act(x, params))
    assert act.shape == (batch,)
    assert jnp.array_equal(act, jnp.argmax(ref, axis=1).astype(jnp.int32))

    print("KERNEL_OK")
</pallas_src>

<mosaic_0001>
module attributes {stable_mosaic.version = 11 : i64} {
  func.func @kernel(%arg0: i32, %arg1: memref<128x8xf32, #tpu.memory_space<vmem>>, %arg2: memref<64x8xf32, #tpu.memory_space<vmem>>, %arg3: memref<64x1xf32, #tpu.memory_space<vmem>>, %arg4: memref<64x64xf32, #tpu.memory_space<vmem>>, %arg5: memref<64x1xf32, #tpu.memory_space<vmem>>, %arg6: memref<4x64xf32, #tpu.memory_space<vmem>>, %arg7: memref<4x1xf32, #tpu.memory_space<vmem>>, %arg8: memref<4x128xf32, #tpu.memory_space<vmem>>) attributes {dimension_semantics = [#tpu.dimension_semantics<parallel>], iteration_bounds = array<i64: 2>, scalar_prefetch = 0 : i64, scratch_operands = 0 : i64, tpu.core_type = #tpu.core_type<tc>, window_params = [{transform_indices = @transform_0, window_bounds = array<i64: 128, 8>}, {pipeline_mode = #tpu.pipeline_mode<synchronous>, transform_indices = @transform_1, window_bounds = array<i64: 64, 8>}, {pipeline_mode = #tpu.pipeline_mode<synchronous>, transform_indices = @transform_2, window_bounds = array<i64: 64, 1>}, {pipeline_mode = #tpu.pipeline_mode<synchronous>, transform_indices = @transform_3, window_bounds = array<i64: 64, 64>}, {pipeline_mode = #tpu.pipeline_mode<synchronous>, transform_indices = @transform_4, window_bounds = array<i64: 64, 1>}, {pipeline_mode = #tpu.pipeline_mode<synchronous>, transform_indices = @transform_5, window_bounds = array<i64: 4, 64>}, {pipeline_mode = #tpu.pipeline_mode<synchronous>, transform_indices = @transform_6, window_bounds = array<i64: 4, 1>}, {transform_indices = @transform_7, window_bounds = array<i64: 4, 128>}]} {
    %c0 = arith.constant 0 : index
    %c0_0 = arith.constant 0 : index
    %0 = vector.load %arg2[%c0, %c0_0] : memref<64x8xf32, #tpu.memory_space<vmem>>, vector<64x8xf32>
    %c0_1 = arith.constant 0 : index
    %c0_2 = arith.constant 0 : index
    %1 = vector.load %arg1[%c0_1, %c0_2] : memref<128x8xf32, #tpu.memory_space<vmem>>, vector<128x8xf32>
    %cst = arith.constant dense<0.000000e+00> : vector<64x128xf32>
    %2 = tpu.matmul %0, %1, %cst {dimension_numbers = #tpu.dot_dimension_numbers<[1], [1], [0], [0], [0, 0, 1, 0], [], []>} : vector<64x8xf32>, vector<128x8xf32>, vector<64x128xf32> -> vector<64x128xf32>
    %c0_3 = arith.constant 0 : index
    %c0_4 = arith.constant 0 : index
    %3 = vector.load %arg3[%c0_3, %c0_4] : memref<64x1xf32, #tpu.memory_space<vmem>>, vector<64x1xf32>
    %4 = vector.broadcast %3 : vector<64x1xf32> to vector<64x128xf32>
    %5 = arith.addf %2, %4 : vector<64x128xf32>
    %6 = math.tanh %5 : vector<64x128xf32>
    %c0_5 = arith.constant 0 : index
    %c0_6 = arith.constant 0 : index
    %7 = vector.load %arg4[%c0_5, %c0_6] : memref<64x64xf32, #tpu.memory_space<vmem>>, vector<64x64xf32>
    %cst_7 = arith.constant dense<0.000000e+00> : vector<64x128xf32>
    %8 = tpu.matmul %7, %6, %cst_7 {dimension_numbers = #tpu.dot_dimension_numbers<[1], [0], [0], [1], [0, 0, 1, 1], [], []>} : vector<64x64xf32>, vector<64x128xf32>, vector<64x128xf32> -> vector<64x128xf32>
    %c0_8 = arith.constant 0 : index
    %c0_9 = arith.constant 0 : index
    %9 = vector.load %arg5[%c0_8, %c0_9] : memref<64x1xf32, #tpu.memory_space<vmem>>, vector<64x1xf32>
    %10 = vector.broadcast %9 : vector<64x1xf32> to vector<64x128xf32>
    %11 = arith.addf %8, %10 : vector<64x128xf32>
    %12 = math.tanh %11 : vector<64x128xf32>
    %c0_10 = arith.constant 0 : index
    %c0_11 = arith.constant 0 : index
    %13 = vector.load %arg6[%c0_10, %c0_11] : memref<4x64xf32, #tpu.memory_space<vmem>>, vector<4x64xf32>
    %cst_12 = arith.constant dense<0.000000e+00> : vector<4x128xf32>
    %14 = tpu.matmul %13, %12, %cst_12 {dimension_numbers = #tpu.dot_dimension_numbers<[1], [0], [0], [1], [0, 0, 1, 1], [], []>} : vector<4x64xf32>, vector<64x128xf32>, vector<4x128xf32> -> vector<4x128xf32>
    %c0_13 = arith.constant 0 : index
    %c0_14 = arith.constant 0 : index
    %15 = vector.load %arg7[%c0_13, %c0_14] : memref<4x1xf32, #tpu.memory_space<vmem>>, vector<4x1xf32>
    %16 = vector.broadcast %15 : vector<4x1xf32> to vector<4x128xf32>
    %17 = arith.addf %14, %16 : vector<4x128xf32>
    %c0_15 = arith.constant 0 : index
    %c0_16 = arith.constant 0 : index
    %18 = vector.load %arg8[%c0_15, %c0_16] : memref<4x128xf32, #tpu.memory_space<vmem>>, vector<4x128xf32>
    tpu.vector_store %arg8[%c0_15, %c0_16], %17 {strides = array<i32>} : memref<4x128xf32, #tpu.memory_space<vmem>>, vector<4x128xf32>,
    return
  }
  func.func @transform_0(%arg0: i32) -> (i32, i32) {
    %c0_i32 = arith.constant 0 : i32
    %c0_i32_0 = arith.constant 0 : i32
    return %arg0, %c0_i32 : i32, i32
  }
  func.func @transform_1(%arg0: i32) -> (i32, i32) {
    %c0_i32 = arith.constant 0 : i32
    %c0_i32_0 = arith.constant 0 : i32
    %c0_i32_1 = arith.constant 0 : i32
    return %c0_i32, %c0_i32_0 : i32, i32
  }
  func.func @transform_2(%arg0: i32) -> (i32, i32) {
    %c0_i32 = arith.constant 0 : i32
    %c0_i32_0 = arith.constant 0 : i32
    %c0_i32_1 = arith.constant 0 : i32
    return %c0_i32, %c0_i32_0 : i32, i32
  }
  func.func @transform_3(%arg0: i32) -> (i32, i32) {
    %c0_i32 = arith.constant 0 : i32
    %c0_i32_0 = arith.constant 0 : i32
    %c0_i32_1 = arith.constant 0 : i32
    return %c0_i32, %c0_i32_0 : i32, i32
  }
  func.func @transform_4(%arg0: i32) -> (i32, i32) {
    %c0_i32 = arith.constant 0 : i32
    %c0_i32_0 = arith.constant 0 : i32
    %c0_i32_1 = arith.constant 0 : i32
    return %c0_i32, %c0_i32_0 : i32, i32
  }
  func.func @transform_5(%arg0: i32) -> (i32, i32) {
    %c0_i32 = arith.constant 0 : i32
    %c0_i32_0 = arith.constant 0 : i32
    %c0_i32_1 = arith.constant 0 : i32
    return %c0_i32, %c0_i32_0 : i32, i32
  }
  func.func @transform_6(%arg0: i32) -> (i32, i32) {
    %c0_i32 = arith.constant 0 : i32
    %c0_i32_0 = arith.constant 0 : i32
    %c0_i32_1 = arith.constant 0 : i32
    return %c0_i32, %c0_i32_0 : i32, i32
  }
  func.func @transform_7(%arg0: i32) -> (i32, i32) {
    %c0_i32 = arith.constant 0 : i32
    %c0_i32_0 = arith.constant 0 : i32
    return %c0_i32, %arg0 : i32, i32
  }
}

</mosaic_0001>

<bundles_post_ra>
// kernel: tpu_custom_call.1
= control target key start
LH: loop header
LB: loop body
LE: loop exit
PB: predicated region body
PF: predicated region fallthrough
CT: control target
= control target key end

     0   :  { %12 = vsyncpa [#allocation3], 0  ;;  %s1234_s0 = inlined_call_operand.vmem [shape: f32[256,8], index: 0, kind: input, shape index: {}]   ;;  %s1235_s1 = inlined_call_operand.vmem [shape: f32[64,8], index: 1, kind: input, shape index: {}]   ;;  %s1236_s2 = inlined_call_operand.vmem [shape: f32[64,1], index: 2, kind: input, shape index: {}]   ;;  %s1237_s3 = inlined_call_operand.vmem [shape: f32[64,64], index: 3, kind: input, shape index: {}]   ;;  %s1238_s4 = inlined_call_operand.vmem [shape: f32[64,1], index: 4, kind: input, shape index: {}]   ;;  %s1239_s5 = inlined_call_operand.vmem [shape: f32[4,64], index: 5, kind: input, shape index: {}]   ;;  %s1240_s6 = inlined_call_operand.vmem [shape: f32[4,1], index: 6, kind: input, shape index: {}]   ;;  %s1241_s7 = inlined_call_operand.hbm [shape: f32[4,256], index: 7, kind: output, shape index: {}]  }
   0x1   :  { %14 = vsyncpa [#allocation3 + $0x1], 0  ;;  %s965_s24 = smov 0   ;;  %s967_s25 = smov 0  }
   0x2   :  { %s969_s26 = smov 0   ;;  %s971_s27 = smov 0  }
   0x3 LB: > { %s986_s28 = sadd.s32 4294967295, %s922_s27   ;;  %s709_s29 = sadd.s32 4294967294, %s922_s27   ;;  %s922_s27 = sphi %s971_s27, %s1247_s27   ;;  %s918_s26 = sphi %s969_s26, %s1246_s26   ;;  %s914_s25 = sphi %s967_s25, %s1245_s25   ;;  %s910_s24 = sphi %s965_s24, %s1244_s24  }
   0x4   : > { %s990_s30 = sadd.s32 1, %s922_s27   ;;  %s179_s8 = sadd.s32 1, %s918_s26 }
   0x5   : > { %s176_s9 = ssub.s32 %s922_s27, %s990_s30  ;;  %p189_p0 = scmp.ne.s32.totalorder %s918_s26, %s914_s25 }
   0x6   : > { %p177_p1 = scmp.eq.s32.totalorder %s176_s9, 0  ;;  %p190_p2 = scmp.eq.s32.totalorder %s986_s28, 1 }
   0x7   : > { %p195_p3 = scmp.ne.s32.totalorder %s914_s25, %s910_s24  ;;  %p196_p4 = scmp.eq.s32.totalorder %s709_s29, 1 }
   0x8   : > { %s1001_s10 = scalar_select %p177_p1, %s918_s26, %s179_s8  }
   0x9   : > { %p1003_p5 = por %p190_p2, %p189_p0  ;;  %p1007_p6 = por %p196_p4, %p195_p3 }
   0xa   : > { %p712_p7 = scmp.ge.s32.totalorder %s922_s27, 1  ;;  %p241_p8 = scmp.lt.s32.totalorder %s922_s27, 3 }
   0xc   : > { %p242_p9 = pnand %p712_p7, %p241_p8 }
   0xd   : > { %s714_s13 = sshll.u32 (!%p242_p9), %s986_s28, 4  ;;  %s270_s18 = sand.u32 (!%p242_p9), 1, %s914_s25  }
   0xe   : > { %245 = sbr.rel (%p242_p9) target bundleno = 601 (0x259), region = 48  ;;  %p274_p10 = scmp.lt.s32.totalorder (!%p242_p9), %s714_s13, 31 }
   0xf   : > { %s713_s19 = sshll.u32 (!%p242_p9), %s270_s18, 2  ;;  %s750_s20 = sshll.u32 (!%p242_p9), %s986_s28, 2 }
  0x10   : > { %s645_s23 = scalar_lea.hbm (!%p242_p9), %s1241_s7, %s750_s20  ;;  %s635_s9 = scalar_lea.sflag (!%p242_p9), [#allocation3], %s270_s18 }
  0x11   : > { %s649_s8 = sshll.u32 (!%p242_p9), %s645_s23, 4  ;;  %s880_s16 = scalar_lea.hbm (!%p242_p9), %s1241_s7, 8  ;;  %s650_s8 = int_to_ptr.hbm [resolvable:$true] %s649_s8 }
  0x13   : > { %s1249_s13 = smov (!%p274_p10, %s714_s13), 31  ;;  %vm351_vm0 = vcmask 64512   ;;  %v310_v5 = vld [vmem:[%s1236_s2 + $0x38] sm:$0xff]  ;;  %v924_v7 = vmov 0   ;;  %v308_v8 = vld [vmem:[%s1236_s2 + $0x28] sm:$0xff]  ;;  %v309_v10 = vld [vmem:[%s1236_s2 + $0x30] sm:$0xff] }
  0x14   : > { %s715_s14 = sshll.u32 %s1249_s13, 3  ;;  %825 = vset.pattern.permute.xlu0 %v924_v7  ;;  %826 = vset.pattern.permute.xlu1 %v924_v7  ;;  %v307_v12 = vld [vmem:[%s1236_s2 + $0x20] sm:$0xff]  ;;  %v304_v14 = vld [vmem:[%s1236_s2 + $0x8] sm:$0xff]  ;;  %v487_v18 = vld [vmem:[%s1238_s4 + $0x30] sm:$0xff]  ;;  %vm529_vm1 = vcmask 523264   ;;  %s874_s13 = sshra.s32 %s650_s8, 4  ;;  %s875_s13 = int_to_ptr.hbm [resolvable:$true] %s874_s13 }
  0x15   : > { %s1017_s17 = scalar_lea.vmem %s1234_s0, %s715_s14  ;;  %348 = vperm.xlu0 %825, %v310_v5   ;;  %827 = vset.pattern.permute.xlu2 %v924_v7  ;;  %v303_v16 = vld [vmem:[%s1236_s2] sm:$0xff]  ;;  %v486_v20 = vld [vmem:[%s1238_s4 + $0x28] sm:$0xff]  ;;  %v484_v22 = vld [vmem:[%s1238_s4 + $0x18] sm:$0xff]  ;;  %s876_s14 = scalar_lea.hbm %s875_s13, 4 }
  0x16   : > { %v302_v0 = vld [vmem:[%s1017_s17 + $0x78] sm:$0xff]  ;;  %v301_v1 = vld [vmem:[%s1017_s17 + $0x70] sm:$0xff]  ;;  %v300_v2 = vld [vmem:[%s1017_s17 + $0x68] sm:$0xff]  ;;  %338 = vperm.xlu1 %826, %v308_v8   ;;  %p877_p11 = scmp.ne.s32.totalorder %s875_s13, %s876_s14  ;;  %p881_p0 = scmp.lt.s32.totalorder %s875_s13, %s1241_s7 }
  0x17   : > { %754 = vmatpush.xpose.msk.msra.mxu3 %vm351_vm0, %v302_v0  ;;  %753 = vmatpush.xpose.msk.msra.mxu2 %vm351_vm0, %v302_v0  ;;  %v299_v3 = vld [vmem:[%s1017_s17 + $0x60] sm:$0xff]  ;;  %v298_v4 = vld [vmem:[%s1017_s17 + $0x58] sm:$0xff]  ;;  %v297_v6 = vld [vmem:[%s1017_s17 + $0x50] sm:$0xff]  ;;  %p882_p1 = scmp.lt.s32.totalorder %s880_s16, %s876_s14 }
  0x18   : > { %716 = vmatpush.xpose.msk.msra.mxu0 %vm351_vm0, %v302_v0  ;;  %v296_v9 = vld [vmem:[%s1017_s17 + $0x48] sm:$0xff]  ;;  %v295_v11 = vld [vmem:[%s1017_s17 + $0x40] sm:$0xff]  ;;  %v294_v13 = vld [vmem:[%s1017_s17 + $0x38] sm:$0xff]  ;;  %p878_p12 = pnand %p877_p11, %p1003_p5 }
  0x19   : > { %v293_v15 = vld [vmem:[%s1017_s17 + $0x30] sm:$0xff]  ;;  %v292_v17 = vld [vmem:[%s1017_s17 + $0x28] sm:$0xff]  ;;  %v291_v19 = vld [vmem:[%s1017_s17 + $0x20] sm:$0xff]  ;;  %p883_p2 = por %p882_p1, %p881_p0 }
  0x1a   : > { %v290_v21 = vld [vmem:[%s1017_s17 + $0x18] sm:$0xff]  ;;  %v289_v24 = vld [vmem:[%s1017_s17 + $0x10] sm:$0xff]  ;;  %v288_v26 = vld [vmem:[%s1017_s17 + $0x8] sm:$0xff]  ;;  %p879_p13 = pneg %p878_p12 }
  0x1b   : > { %756 = vmatpush.xpose.msk.msra.mxu3 %vm351_vm0, %v301_v1  ;;  %755 = vmatpush.xpose.msk.msra.mxu2 %vm351_vm0, %v301_v1  ;;  %v306_v23 = vld [vmem:[%s1236_s2 + $0x18] sm:$0xff]  ;;  %v483_v25 = vld [vmem:[%s1238_s4 + $0x10] sm:$0xff]  ;;  %v481_v28 = vld [vmem:[%s1238_s4] sm:$0xff] }
  0x1c   : > { %717 = vmatpush.xpose.msk.msra.mxu0 %vm351_vm0, %v301_v1  ;;  %328 = vperm.xlu2 %827, %v306_v23   ;;  %v305_v27 = vld [vmem:[%s1236_s2 + $0x10] sm:$0xff]  ;;  %v287_v29 = vld [vmem:[%s1017_s17] sm:$0xff]  ;;  %v284_v31 = vld [vmem:[%s1235_s1 + $0x28] sm:$0xff]  ;;  %s272_s17 = scalar_lea.vmem [#allocation2], %s713_s19  ;;  %p884_p3 = pnand %p883_p2, %p879_p13 }
  0x1d   : > { %343 = vperm.xlu0 %825, %v309_v10   ;;  %v604_v30 = vld [vmem:[%s1240_s6] sm:$0xf]  ;;  %v282_v32 = vld [vmem:[%s1235_s1 + $0x18] sm:$0xff]  ;;  %v285_v35 = vld [vmem:[%s1235_s1 + $0x30] sm:$0xff]  ;;  %s647_s29 = sshll.u32 %s272_s17, 4  ;;  %s648_s29 = int_to_ptr.vmem [resolvable:$true] %s647_s29 }
  0x1e   : > { %333 = vperm.xlu1 %826, %v307_v12   ;;  %v279_v33 = vld [vmem:[%s1235_s1] sm:$0xff]  ;;  %v488_v34 = vld [vmem:[%s1238_s4 + $0x38] sm:$0xff]  ;;  %v280_v37 = vld [vmem:[%s1235_s1 + $0x8] sm:$0xff] }
  0x1f   : > { %758 = vmatpush.xpose.msk.msra.mxu3 %vm351_vm0, %v300_v2  ;;  %757 = vmatpush.xpose.msk.msra.mxu2 %vm351_vm0, %v300_v2  ;;  %v283_v36 = vld [vmem:[%s1235_s1 + $0x20] sm:$0xff]  ;;  %v286_v39 = vld [vmem:[%s1235_s1 + $0x38] sm:$0xff]  ;;  %v281_v40 = vld [vmem:[%s1235_s1 + $0x10] sm:$0xff] }
  0x20   : > { %718 = vmatpush.xpose.msk.msra.mxu0 %vm351_vm0, %v300_v2  ;;  %v485_v38 = vld [vmem:[%s1238_s4 + $0x20] sm:$0xff]  ;;  %v482_v41 = vld [vmem:[%s1238_s4 + $0x8] sm:$0xff]  ;;  %v475_v12 = vld [vmem:[%s1237_s3 + $0x10] sm:$0xff] }
  0x23   : > { %760 = vmatpush.xpose.msk.msra.mxu3 %vm351_vm0, %v299_v3  ;;  %759 = vmatpush.xpose.msk.msra.mxu2 %vm351_vm0, %v299_v3 }
  0x24   : > { %719 = vmatpush.xpose.msk.msra.mxu0 %vm351_vm0, %v299_v3  ;;  %323 = vperm.xlu2 %827, %v305_v27  }
  0x25   : > { %318 = vperm.xlu0 %825, %v304_v14   ;;  %v477_v14 = vld [vmem:[%s1237_s3 + $0x20] sm:$0xff] }
  0x26   : > { %313 = vperm.xlu1 %826, %v303_v16   ;;  %v479_v16 = vld [vmem:[%s1237_s3 + $0x30] sm:$0xff] }
  0x27   : > { %762 = vmatpush.xpose.msk.msra.mxu3 %vm351_vm0, %v298_v4  ;;  %761 = vmatpush.xpose.msk.msra.mxu2 %vm351_vm0, %v298_v4 }
  0x28   : > { %720 = vmatpush.xpose.msk.msra.mxu0 %vm351_vm0, %v298_v4 }
  0x2b   : > { %764 = vmatpush.xpose.msk.msra.mxu3 %vm351_vm0, %v297_v6  ;;  %763 = vmatpush.xpose.msk.msra.mxu2 %vm351_vm0, %v297_v6 }
  0x2c   : > { %721 = vmatpush.xpose.msk.msra.mxu0 %vm351_vm0, %v297_v6  ;;  %526 = vperm.xlu2 %827, %v488_v34  }
  0x2d   : > { %521 = vperm.xlu0 %825, %v487_v18  }
  0x2e   : > { %516 = vperm.xlu1 %826, %v486_v20  }
  0x2f   : > { %766 = vmatpush.xpose.msk.msra.mxu3 %vm351_vm0, %v296_v9  ;;  %765 = vmatpush.xpose.msk.msra.mxu2 %vm351_vm0, %v296_v9 }
  0x30   : > { %722 = vmatpush.xpose.msk.msra.mxu0 %vm351_vm0, %v296_v9  ;;  %v473_v9 = vld [vmem:[%s1237_s3] sm:$0xff] }
  0x33   : > { %768 = vmatpush.xpose.msk.msra.mxu3 %vm351_vm0, %v295_v11  ;;  %767 = vmatpush.xpose.msk.msra.mxu2 %vm351_vm0, %v295_v11 }
  0x34   : > { %723 = vmatpush.xpose.msk.msra.mxu0 %vm351_vm0, %v295_v11  ;;  %511 = vperm.xlu2 %827, %v485_v38   ;;  %v474_v11 = vld [vmem:[%s1237_s3 + $0x8] sm:$0xff] }
  0x35   : > { %506 = vperm.xlu0 %825, %v484_v22  }
  0x36   : > { %501 = vperm.xlu1 %826, %v483_v25  }
  0x37   : > { %770 = vmatpush.xpose.msk.msra.mxu3 %vm351_vm0, %v294_v13  ;;  %769 = vmatpush.xpose.msk.msra.mxu2 %vm351_vm0, %v294_v13 }
  0x38   : > { %724 = vmatpush.xpose.msk.msra.mxu0 %vm351_vm0, %v294_v13  ;;  %v476_v13 = vld [vmem:[%s1237_s3 + $0x18] sm:$0xff] }
  0x3b   : > { %772 = vmatpush.xpose.msk.msra.mxu3 %vm351_vm0, %v293_v15  ;;  %771 = vmatpush.xpose.msk.msra.mxu2 %vm351_vm0, %v293_v15 }
  0x3c   : > { %725 = vmatpush.xpose.msk.msra.mxu0 %vm351_vm0, %v293_v15  ;;  %496 = vperm.xlu2 %827, %v482_v41   ;;  %v478_v15 = vld [vmem:[%s1237_s3 + $0x28] sm:$0xff] }
  0x3d   : > { %491 = vperm.xlu0 %825, %v481_v28  }
  0x3e   : > { %607 = vperm.xlu1 %826, %v604_v30  }
  0x3f   : > { %774 = vmatpush.xpose.msk.msra.mxu3 %vm351_vm0, %v292_v17  ;;  %773 = vmatpush.xpose.msk.msra.mxu2 %vm351_vm0, %v292_v17 }
  0x40   : > { %726 = vmatpush.xpose.msk.msra.mxu0 %vm351_vm0, %v292_v17  ;;  %v480_v17 = vld [vmem:[%s1237_s3 + $0x38] sm:$0xff] }
  0x43   : > { %776 = vmatpush.xpose.msk.msra.mxu3 %vm351_vm0, %v291_v19  ;;  %775 = vmatpush.xpose.msk.msra.mxu2 %vm351_vm0, %v291_v19 }
  0x44   : > { %727 = vmatpush.xpose.msk.msra.mxu0 %vm351_vm0, %v291_v19 }
  0x47   : > { %778 = vmatpush.xpose.msk.msra.mxu3 %vm351_vm0, %v290_v21  ;;  %777 = vmatpush.xpose.msk.msra.mxu2 %vm351_vm0, %v290_v21 }
  0x48   : > { %728 = vmatpush.xpose.msk.msra.mxu0 %vm351_vm0, %v290_v21 }
  0x4b   : > { %780 = vmatpush.xpose.msk.msra.mxu3 %vm351_vm0, %v289_v24  ;;  %779 = vmatpush.xpose.msk.msra.mxu2 %vm351_vm0, %v289_v24 }
  0x4c   : > { %729 = vmatpush.xpose.msk.msra.mxu0 %vm351_vm0, %v289_v24 }
  0x4f   : > { %782 = vmatpush.xpose.msk.msra.mxu3 %vm351_vm0, %v288_v26  ;;  %781 = vmatpush.xpose.msk.msra.mxu2 %vm351_vm0, %v288_v26 }
  0x50   : > { %730 = vmatpush.xpose.msk.msra.mxu0 %vm351_vm0, %v288_v26 }
  0x53   : > { %784 = vmatpush.xpose.msk.msra.mxu3 %vm351_vm0, %v287_v29  ;;  %783 = vmatpush.xpose.msk.msra.mxu2 %vm351_vm0, %v287_v29 }
  0x54   : > { %731 = vmatpush.xpose.msk.msra.mxu0 %vm351_vm0, %v287_v29 }
  0x56   : > { %737 = vmatmul.msk.f32.vlgmr.msra.gmra.mxu3 %vm351_vm0, %v284_v31  ;;  %735 = vmatmul.msk.f32.vlgmr.msra.gmra.mxu2 %vm351_vm0, %v282_v32 }
  0x57   : > { %732 = vmatmul.msk.f32.vlgmr.msra.gmra.mxu0 %vm351_vm0, %v279_v33 }
  0x5e   : > { %738 = vmatmul.msk.f32.gmra.mxu3 %vm351_vm0, %v285_v35  ;;  %736 = vmatmul.msk.f32.gmra.mxu2 %vm351_vm0, %v283_v36 }
  0x5f   : > { %733 = vmatmul.msk.f32.gmra.mxu0 %vm351_vm0, %v280_v37 }
  0x66   : > { %739 = vmatmul.msk.f32.gmra.mxu3 %vm351_vm0, %v286_v39 }
  0x67   : > { %734 = vmatmul.msk.f32.gmra.mxu0 %vm351_vm0, %v281_v40 }
  0x76   : > { %v329_v49 = vpop.permute.xlu2 %328 }
  0x7e   : > { %v324_v60 = vpop.permute.xlu2 %323 }
  0x86   : > { %v527_v24 = vpop.permute.xlu2 %526 }
  0x87   : > { %v349_v44 = vpop.permute.xlu0 %348 }
  0x88   : > { %v339_v45 = vpop.permute.xlu1 %338 }
  0x8e   : > { %v512_v28 = vpop.permute.xlu2 %511 }
  0x8f   : > { %v344_v50 = vpop.permute.xlu0 %343 }
  0x90   : > { %v334_v54 = vpop.permute.xlu1 %333 }
  0x96   : > { %v497_v39 = vpop.permute.xlu2 %496 }
  0x97   : > { %v319_v63 = vpop.permute.xlu0 %318 }
  0x98   : > { %v314_v2 = vpop.permute.xlu1 %313 }
  0x9f   : > { %v522_v25 = vpop.permute.xlu0 %521 }
  0xa0   : > { %v517_v27 = vpop.permute.xlu1 %516 }
  0xa7   : > { %v507_v32 = vpop.permute.xlu0 %506 }
  0xa8   : > { %v502_v36 = vpop.permute.xlu1 %501 }
  0xd4   : > { %v441_v43 = vpop.f32.mrf.mxu0 }
  0xd5   : > { %v442_v4 = vadd.f32 %v441_v43, %v314_v2 }
  0xd9   : > { %v456_v42 = vpop.f32.mrf.mxu3  ;;  %v450_v46 = vpop.f32.mrf.mxu2 }
  0xda   : > { %v457_v56 = vadd.f32 %v456_v42, %v339_v45  ;;  %v451_v59 = vadd.f32 %v450_v46, %v329_v49  ;;  %v492_v42 = vpop.permute.xlu0 %491  ;;  %v603_v49 = vld [vmem:[%s1239_s5] sm:$0xf] }
  0xdc   : > { %v444_v48 = vpop.f32.mrf.mxu0 }
  0xdd   : > { %v445_v1 = vadd.f32 %v444_v48, %v319_v63 }
  0xe1   : > { %v459_v47 = vpop.f32.mrf.mxu3  ;;  %v453_v55 = vpop.f32.mrf.mxu2 }
  0xe2   : > { %v460_v52 = vadd.f32 %v459_v47, %v344_v50  ;;  %v454_v57 = vadd.f32 %v453_v55, %v334_v54 }
  0xe4   : > { %v447_v58 = vpop.f32.mrf.mxu0 }
  0xe5   : > { %v448_v62 = vadd.f32 %v447_v58, %v324_v60 }
  0xe9   : > { %v462_v51 = vpop.f32.mrf.mxu3 }
  0xea   : > { %v463_v53 = vadd.f32 %v462_v51, %v349_v44  ;;  %v608_v51 = vpop.permute.xlu1 %607 }
  0xec   : > { %828 = vtanh.f32 %v463_v53 }
  0xed   : > { %830 = vtanh.f32 %v460_v52 }
  0xee   : > { %832 = vtanh.f32 %v457_v56 }
  0xef   : > { %834 = vtanh.f32 %v454_v57 }
  0xf0   : > { %836 = vtanh.f32 %v451_v59 }
  0xf1   : > { %838 = vtanh.f32 %v448_v62 }
  0xf2   : > { %v829_v61 = vpop.eup %828  ;;  %840 = vtanh.f32 %v445_v1 }
  0xf3   : > { %562 = vmatpush.msra.mxu1 %v829_v61  ;;  %v831_v0 = vpop.eup %830  ;;  %842 = vtanh.f32 %v442_v4 }
  0xf4   : > { %v833_v3 = vpop.eup %832 }
  0xf5   : > { %563 = vmatpush.msra.mxu1 %v831_v0  ;;  %v835_v5 = vpop.eup %834 }
  0xf6   : > { %v837_v6 = vpop.eup %836 }
  0xf7   : > { %564 = vmatpush.msra.mxu1 %v833_v3  ;;  %v839_v7 = vpop.eup %838 }
  0xf8   : > { %v841_v8 = vpop.eup %840 }
  0xf9   : > { %565 = vmatpush.msra.mxu1 %v835_v5  ;;  %v843_v10 = vpop.eup %842 }
  0xfb   : > { %566 = vmatpush.msra.mxu1 %v837_v6 }
  0xfd   : > { %567 = vmatpush.msra.mxu1 %v839_v7 }
  0xff   : > { %568 = vmatpush.msra.mxu1 %v841_v8 }
 0x101   : > { %569 = vmatpush.msra.mxu1 %v843_v10 }
 0x102   : > { %740 = vmatmul.msk.f32.vlgmr.msra.gmra.mxu1 %vm529_vm1, %v473_v9 }
 0x10a   : > { %741 = vmatmul.msk.f32.gmra.mxu1 %vm529_vm1, %v474_v11 }
 0x112   : > { %742 = vmatmul.msk.f32.gmra.mxu1 %vm529_vm1, %v475_v12 }
 0x11a   : > { %743 = vmatmul.msk.f32.gmra.mxu1 %vm529_vm1, %v476_v13 }
 0x122   : > { %744 = vmatmul.msk.f32.gmra.mxu1 %vm529_vm1, %v477_v14 }
 0x12a   : > { %745 = vmatmul.msk.f32.gmra.mxu1 %vm529_vm1, %v478_v15 }
 0x132   : > { %746 = vmatmul.msk.f32.gmra.mxu1 %vm529_vm1, %v479_v16 }
 0x13a   : > { %747 = vmatmul.msk.f32.gmra.mxu1 %vm529_vm1, %v480_v17 }
 0x17f   : > { %v571_v18 = vpop.f32.mrf.mxu1 }
 0x180   : > { %v572_v44 = vadd.f32 %v571_v18, %v492_v42 }
 0x187   : > { %v574_v19 = vpop.f32.mrf.mxu1 }
 0x188   : > { %v575_v41 = vadd.f32 %v574_v19, %v497_v39 }
 0x18f   : > { %v577_v20 = vpop.f32.mrf.mxu1 }
 0x190   : > { %v578_v38 = vadd.f32 %v577_v20, %v502_v36 }
 0x197   : > { %v580_v21 = vpop.f32.mrf.mxu1 }
 0x198   : > { %v581_v35 = vadd.f32 %v580_v21, %v507_v32 }
 0x19f   : > { %v583_v22 = vpop.f32.mrf.mxu1 }
 0x1a0   : > { %v584_v34 = vadd.f32 %v583_v22, %v512_v28 }
 0x1a7   : > { %v586_v23 = vpop.f32.mrf.mxu1 }
 0x1a8   : > { %v587_v33 = vadd.f32 %v586_v23, %v517_v27 }
 0x1af   : > { %v589_v26 = vpop.f32.mrf.mxu1 }
 0x1b0   : > { %v590_v30 = vadd.f32 %v589_v26, %v522_v25 }
 0x1b7   : > { %v592_v29 = vpop.f32.mrf.mxu1 }
 0x1b8   : > { %v593_v31 = vadd.f32 %v592_v29, %v527_v24 }
 0x1ba   : > { %844 = vtanh.f32 %v593_v31 }
 0x1bb   : > { %846 = vtanh.f32 %v590_v30 }
 0x1bc   : > { %848 = vtanh.f32 %v587_v33 }
 0x1bd   : > { %850 = vtanh.f32 %v584_v34 }
 0x1be   : > { %852 = vtanh.f32 %v581_v35 }
 0x1bf   : > { %854 = vtanh.f32 %v578_v38 }
 0x1c0   : > { %v845_v37 = vpop.eup %844  ;;  %856 = vtanh.f32 %v575_v41 }
 0x1c1   : > { %621 = vmatpush.msrb.mxu2 %v845_v37  ;;  %v847_v40 = vpop.eup %846  ;;  %858 = vtanh.f32 %v572_v44 }
 0x1c2   : > { %v849_v43 = vpop.eup %848 }
 0x1c3   : > { %622 = vmatpush.msrb.mxu2 %v847_v40  ;;  %v851_v45 = vpop.eup %850 }
 0x1c4   : > { %v853_v46 = vpop.eup %852 }
 0x1c5   : > { %623 = vmatpush.msrb.mxu2 %v849_v43  ;;  %v855_v47 = vpop.eup %854 }
 0x1c6   : > { %v857_v48 = vpop.eup %856 }
 0x1c7   : > { %624 = vmatpush.msrb.mxu2 %v851_v45  ;;  %v859_v50 = vpop.eup %858 }
 0x1c9   : > { %625 = vmatpush.msrb.mxu2 %v853_v46 }
 0x1cb   : > { %626 = vmatpush.msrb.mxu2 %v855_v47 }
 0x1cd   : > { %627 = vmatpush.msrb.mxu2 %v857_v48 }
 0x1cf   : > { %628 = vmatpush.msrb.mxu2 %v859_v50 }
 0x1d0   : > { %748 = vmatmul.msk.f32.vlgmr.msrb.gmra.mxu2 %vm529_vm1, %v603_v49 }
 0x253   : > { %v630_v52 = vpop.f32.mrf.mxu2 }
 0x254   : > { %v631_v53 = vadd.f32 %v630_v52, %v608_v51 }
 0x256   : > { %633 = vst [vmem:[%s272_s17] sm:$0xf] %v631_v53 }
 0x257   : > { %887 = shalt.err (!%p884_p3)
}
 0x258   : > { %785 = dma.vmem_to_hbm [thread:$0]  (%p1003_p5), %s648_s29, 64, %s650_s8, %s635_s9  }
 0x259 PF: > { %p791_p4 = scmp.ge.s32.totalorder %s922_s27, 2  ;;  %s661_s18 = sand.u32 1, %s910_s24  }
 0x25a   : > { %s662_s21 = scalar_lea.sflag [#allocation3], %s661_s18 }
 0x25b   : > { %p788_p7 = pnand %p791_p4, %p1007_p6 }
 0x25d   : > { %p789_p8 = pneg %p788_p7 }
 0x25f   : > { %905 = dma.done.wait (%p789_p8), %s662_s21, 64  }
 0x260   : > { %907 = vsyncadd (%p789_p8), %s662_s21, 4294967232  ;;  %p17_p9 = scmp.ge.s32.totalorder %s990_s30, 4   ;;  %s1244_s24 = smov %s914_s25 }
 0x261   : > { %s1245_s25 = smov %s918_s26  ;;  %s1246_s26 = smov %s1001_s10 }
 0x262   : > { %s1247_s27 = smov %s990_s30  ;;  %19 = sbr.rel (!%p17_p9) target bundleno = 3 (0x3), region = 83 }
 0x267   :  { %668 = vsyncpa [#allocation3], 1 }
 0x268   :  { %670 = vsyncpa [#allocation3 + $0x1], 1 }

</bundles_post_ra>
